<compile_context>
chip_gen: v6e
topology: v6e:2x2x1
jax: 0.10.0
libtpu: 0.0.40
codegen_flags: <defaults>
</compile_context>

<pallas_src>
import math
from functools import partial

import jax
import jax.numpy as jnp
from jax.experimental import pallas as pl
from jax.experimental.pallas import tpu as pltpu


def _round_up(x, m):
    return ((x + m - 1) // m) * m


def _gcn_fused_kernel(fea_ref, adj_ref, w_ref, b_ref, out_ref, *, num_layers, inv_scale):
    """Fused GCN forward: all layers + residual accumulation + final scaling.

    fea_ref : (Np, Fp)      zero-padded node features (lane-dense, Fp % 128 == 0)
    adj_ref : (Np, Np)      zero-padded dense adjacency
    w_ref   : (L, Fp, Fp)   zero-padded stacked layer weights
    b_ref   : (L, 1, Fp)    zero-padded stacked layer biases
    out_ref : (Np, Fp)      (tmp_fea / (L + 1)), still padded
    """
    x = fea_ref[...]
    adj = adj_ref[...]
    learn = x           # learn_fea
    acc = x             # tmp_fea accumulator (stays resident — no HBM bounce)
    # Static unroll over layers (L is small); two MXU matmuls + bias per layer.
    for l in range(num_layers):
        support = jnp.dot(learn, w_ref[l], preferred_element_type=jnp.float32)
        learn = jnp.dot(adj, support, preferred_element_type=jnp.float32) + b_ref[l]
        acc = acc + learn
    out_ref[...] = (acc * inv_scale).astype(out_ref.dtype)


def gcn_forward(fea, adj, params):
    """GCN.forward (inference mode), fully fused into a single pallas_call."""
    n, f = fea.shape
    num_layers = len(params)

    # Lane-dense padding: node dim -> multiple of 8 (sublanes),
    # feature dim -> multiple of 128 (lanes) so stores are unmasked.
    n_p = _round_up(n, 8)
    f_p = _round_up(f, 128)

    fea_p = jnp.pad(fea.astype(jnp.float32), ((0, n_p - n), (0, f_p - f)))
    adj_p = jnp.pad(adj.astype(jnp.float32), ((0, n_p - n), (0, n_p - n)))

    w_stack = jnp.zeros((num_layers, f_p, f_p), jnp.float32)
    b_stack = jnp.zeros((num_layers, 1, f_p), jnp.float32)
    for l, (w, b) in enumerate(params):
        fi, fo = w.shape
        w_stack = w_stack.at[l, :fi, :fo].set(w.astype(jnp.float32))
        b_stack = b_stack.at[l, 0, :fo].set(b.astype(jnp.float32))

    # Advisory cost estimate so XLA schedules surrounding ops sensibly.
    flops = num_layers * (2 * n_p * f_p * f_p + 2 * n_p * n_p * f_p)
    bytes_accessed = 4 * (
        fea_p.size + adj_p.size + w_stack.size + b_stack.size + n_p * f_p
    )

    out_p = pl.pallas_call(
        partial(
            _gcn_fused_kernel,
            num_layers=num_layers,
            inv_scale=1.0 / (num_layers + 1),
        ),
        out_shape=jax.ShapeDtypeStruct((n_p, f_p), jnp.float32),
        # Everything fits comfortably in VMEM at these shapes: full-array blocks.
        in_specs=[
            pl.BlockSpec(memory_space=pltpu.MemorySpace.VMEM),
            pl.BlockSpec(memory_space=pltpu.MemorySpace.VMEM),
            pl.BlockSpec(memory_space=pltpu.MemorySpace.VMEM),
            pl.BlockSpec(memory_space=pltpu.MemorySpace.VMEM),
        ],
        out_specs=pl.BlockSpec(memory_space=pltpu.MemorySpace.VMEM),
        cost_estimate=pl.CostEstimate(
            flops=int(flops), transcendentals=0, bytes_accessed=int(bytes_accessed)
        ),
        compiler_params=pltpu.CompilerParams(vmem_limit_bytes=64 << 20),
    )(fea_p, adj_p, w_stack, b_stack)

    return out_p[:n, :f]


def init_gcn_params(key, num_layers, emb_size, hidden_size):
    """Mirror GraphConvolution.reset_parameters: U(-stdv, stdv), stdv=1/sqrt(F_out)."""
    params = []
    for i in range(num_layers):
        f_in = emb_size if i == 0 else hidden_size
        f_out = emb_size if i == num_layers - 1 else hidden_size
        key, kw, kb = jax.random.split(key, 3)
        stdv = 1.0 / math.sqrt(f_out)
        w = jax.random.uniform(kw, (f_in, f_out), jnp.float32, -stdv, stdv)
        b = jax.random.uniform(kb, (f_out,), jnp.float32, -stdv, stdv)
        params.append((w, b))
    return params


if __name__ == "__main__":
    # Small shapes: N=16 nodes, emb_size == hidden_size == 32 (required so
    # tmp_fea + learn_fea broadcasts across all layers), 2 GNN layers.
    num_nodes = 16
    emb_size = 32
    hidden_size = 32
    num_gnn_layers = 2

    key = jax.random.PRNGKey(0)
    k_fea, k_adj, k_params = jax.random.split(key, 3)

    fea = jax.random.normal(k_fea, (num_nodes, emb_size), jnp.float32)

    # Symmetric row-normalized dense adjacency with self-loops.
    a = (jax.random.uniform(k_adj, (num_nodes, num_nodes)) > 0.7).astype(jnp.float32)
    a = jnp.maximum(a, a.T) + jnp.eye(num_nodes, dtype=jnp.float32)
    adj = a / jnp.sum(a, axis=1, keepdims=True)

    params = init_gcn_params(k_params, num_gnn_layers, emb_size, hidden_size)

    out = gcn_forward(fea, adj, params)
    jax.block_until_ready(out)

    # Pure-JAX reference check of the fused-forward semantics.
    learn = fea
    ref = fea
    for (w, b) in params:
        learn = adj @ (learn @ w) + b          # dropout is identity in eval mode
        ref = ref + learn
    ref = ref / (num_gnn_layers + 1)
    assert out.shape == ref.shape, "shape mismatch vs reference"
    assert jnp.allclose(out, ref, atol=1e-4, rtol=1e-4), "mismatch vs reference"

    print("KERNEL_OK")
</pallas_src>

<mosaic_0001>
module attributes {stable_mosaic.version = 11 : i64} {
  func.func @_gcn_fused_kernel(%arg0: memref<16x128xf32, #tpu.memory_space<vmem>>, %arg1: memref<16x16xf32, #tpu.memory_space<vmem>>, %arg2: memref<2x128x128xf32, #tpu.memory_space<vmem>>, %arg3: memref<2x1x128xf32, #tpu.memory_space<vmem>>, %arg4: memref<16x128xf32, #tpu.memory_space<vmem>>) attributes {dimension_semantics = [], scalar_prefetch = 0 : i64, scratch_operands = 0 : i64, tpu.core_type = #tpu.core_type<tc>} {
    %c0 = arith.constant 0 : index
    %c0_0 = arith.constant 0 : index
    %0 = vector.load %arg0[%c0, %c0_0] : memref<16x128xf32, #tpu.memory_space<vmem>>, vector<16x128xf32>
    %c0_1 = arith.constant 0 : index
    %c0_2 = arith.constant 0 : index
    %1 = vector.load %arg1[%c0_1, %c0_2] : memref<16x16xf32, #tpu.memory_space<vmem>>, vector<16x16xf32>
    %c0_3 = arith.constant 0 : index
    %c0_4 = arith.constant 0 : index
    %c0_5 = arith.constant 0 : index
    %2 = vector.load %arg2[%c0_3, %c0_4, %c0_5] : memref<2x128x128xf32, #tpu.memory_space<vmem>>, vector<1x128x128xf32>
    %3 = vector.shape_cast %2 : vector<1x128x128xf32> to vector<128x128xf32>
    %cst = arith.constant dense<0.000000e+00> : vector<16x128xf32>
    %4 = tpu.matmul %0, %3, %cst {dimension_numbers = #tpu.dot_dimension_numbers<[1], [0], [0], [1], [0, 0, 1, 1], [], []>} : vector<16x128xf32>, vector<128x128xf32>, vector<16x128xf32> -> vector<16x128xf32>
    %cst_6 = arith.constant dense<0.000000e+00> : vector<16x128xf32>
    %5 = tpu.matmul %1, %4, %cst_6 {dimension_numbers = #tpu.dot_dimension_numbers<[1], [0], [0], [1], [0, 0, 1, 1], [], []>} : vector<16x16xf32>, vector<16x128xf32>, vector<16x128xf32> -> vector<16x128xf32>
    %c0_7 = arith.constant 0 : index
    %c0_8 = arith.constant 0 : index
    %c0_9 = arith.constant 0 : index
    %6 = vector.load %arg3[%c0_7, %c0_8, %c0_9] : memref<2x1x128xf32, #tpu.memory_space<vmem>>, vector<1x1x128xf32>
    %7 = vector.shape_cast %6 : vector<1x1x128xf32> to vector<1x128xf32>
    %8 = vector.broadcast %7 : vector<1x128xf32> to vector<16x128xf32>
    %9 = arith.addf %5, %8 : vector<16x128xf32>
    %10 = arith.addf %0, %9 : vector<16x128xf32>
    %c1 = arith.constant 1 : index
    %c0_10 = arith.constant 0 : index
    %c0_11 = arith.constant 0 : index
    %11 = vector.load %arg2[%c1, %c0_10, %c0_11] : memref<2x128x128xf32, #tpu.memory_space<vmem>>, vector<1x128x128xf32>
    %12 = vector.shape_cast %11 : vector<1x128x128xf32> to vector<128x128xf32>
    %cst_12 = arith.constant dense<0.000000e+00> : vector<16x128xf32>
    %13 = tpu.matmul %9, %12, %cst_12 {dimension_numbers = #tpu.dot_dimension_numbers<[1], [0], [0], [1], [0, 0, 1, 1], [], []>} : vector<16x128xf32>, vector<128x128xf32>, vector<16x128xf32> -> vector<16x128xf32>
    %cst_13 = arith.constant dense<0.000000e+00> : vector<16x128xf32>
    %14 = tpu.matmul %1, %13, %cst_13 {dimension_numbers = #tpu.dot_dimension_numbers<[1], [0], [0], [1], [0, 0, 1, 1], [], []>} : vector<16x16xf32>, vector<16x128xf32>, vector<16x128xf32> -> vector<16x128xf32>
    %c1_14 = arith.constant 1 : index
    %c0_15 = arith.constant 0 : index
    %c0_16 = arith.constant 0 : index
    %15 = vector.load %arg3[%c1_14, %c0_15, %c0_16] : memref<2x1x128xf32, #tpu.memory_space<vmem>>, vector<1x1x128xf32>
    %16 = vector.shape_cast %15 : vector<1x1x128xf32> to vector<1x128xf32>
    %17 = vector.broadcast %16 : vector<1x128xf32> to vector<16x128xf32>
    %18 = arith.addf %14, %17 : vector<16x128xf32>
    %19 = arith.addf %10, %18 : vector<16x128xf32>
    %cst_17 = arith.constant 0.333333343 : f32
    %20 = vector.broadcast %cst_17 : f32 to vector<16x128xf32>
    %21 = arith.mulf %19, %20 : vector<16x128xf32>
    %c0_18 = arith.constant 0 : index
    %c0_19 = arith.constant 0 : index
    %22 = vector.load %arg4[%c0_18, %c0_19] : memref<16x128xf32, #tpu.memory_space<vmem>>, vector<16x128xf32>
    tpu.vector_store %arg4[%c0_18, %c0_19], %21 {strides = array<i32>} : memref<16x128xf32, #tpu.memory_space<vmem>>, vector<16x128xf32>,
    return
  }
}

</mosaic_0001>

<bundles_post_ra>
// kernel: tpu_custom_call.1
= control target key start
LH: loop header
LB: loop body
LE: loop exit
PB: predicated region body
PF: predicated region fallthrough
CT: control target
= control target key end

     0   :  { %9 = vsyncpa [#allocation3], 0  ;;  %s748_s0 = inlined_call_operand.hbm [shape: f32[16,128], index: 0, kind: input, shape index: {}]   ;;  %s749_s1 = inlined_call_operand.hbm [shape: f32[16,16], index: 1, kind: input, shape index: {}]   ;;  %s750_s2 = inlined_call_operand.hbm [shape: f32[2,128,128], index: 2, kind: input, shape index: {}]   ;;  %s751_s3 = inlined_call_operand.vmem [shape: f32[2,1,128], index: 3, kind: input, shape index: {}]   ;;  %s752_s4 = inlined_call_operand.hbm [shape: f32[16,128], index: 4, kind: output, shape index: {}]  }
   0x1   :  { %10 = vsyncpa [#allocation6], 0 }
   0x2   :  { %11 = vsyncpa [#allocation4], 0  ;;  %s671_s15 = smov [#allocation5]   ;;  %s672_s17 = smov [#allocation2]  }
   0x3   :  { %s29_s16 = sshll.u32 %s671_s15, 4  ;;  %s17_s18 = sshll.u32 %s672_s17, 4  ;;  %s30_s16 = int_to_ptr.vmem [resolvable:$true] %s29_s16  ;;  %s18_s18 = int_to_ptr.vmem [resolvable:$true] %s17_s18 }
   0x4   :  { %s593_s19 = scalar_lea.vmem %s30_s16, 256  ;;  %p598_p1 = scmp.lt.s32.totalorder %s30_s16, %s30_s16 }
   0x5   :  { %p594_p0 = scmp.ne.s32.totalorder %s30_s16, %s593_s19  ;;  %p599_p2 = scmp.lt.s32.totalorder %s593_s19, %s593_s19 }
   0x7   :  { %p600_p3 = por %p599_p2, %p598_p1 }
   0x9   :  { %p601_p4 = pnand %p600_p3, %p594_p0 }
   0xb   :  { %604 = shalt.err (!%p601_p4)
}
   0xc   :  { %s673_s20 = smov 128   ;;  %s674_s21 = smov 8  }
   0xd   :  { %35 = dma.hbm_to_vmem [thread:$0]  %s749_s1, 256, %s30_s16, [#allocation6], %s673_s20, %s673_s20, %s674_s21  }
   0xe   :  { %s613_s24 = scalar_lea.vmem %s18_s18, 256  ;;  %p618_p6 = scmp.lt.s32.totalorder %s18_s18, %s18_s18 }
   0xf   :  { %p614_p5 = scmp.ne.s32.totalorder %s18_s18, %s613_s24  ;;  %p619_p7 = scmp.lt.s32.totalorder %s613_s24, %s613_s24 }
  0x11   :  { %p620_p8 = por %p619_p7, %p618_p6 }
  0x13   :  { %p621_p9 = pnand %p620_p8, %p614_p5 }
  0x15   :  { %624 = shalt.err (!%p621_p9)
}
  0x16   :  { %23 = dma.hbm_to_vmem [thread:$0]  %s748_s0, 256, %s18_s18, [#allocation3], %s673_s20, %s673_s20, %s674_s21  }
  0x17   :  { %s675_s27 = smov [#allocation7]  }
  0x18   :  { %s41_s28 = sshll.u32 %s675_s27, 4  ;;  %s42_s28 = int_to_ptr.vmem [resolvable:$true] %s41_s28 }
  0x19   :  { %s633_s29 = scalar_lea.vmem %s42_s28, 4096  ;;  %p638_p11 = scmp.lt.s32.totalorder %s42_s28, %s42_s28 }
  0x1a   :  { %p634_p10 = scmp.ne.s32.totalorder %s42_s28, %s633_s29  ;;  %p639_p12 = scmp.lt.s32.totalorder %s633_s29, %s633_s29 }
  0x1c   :  { %p640_p13 = por %p639_p12, %p638_p11 }
  0x1e   :  { %p641_p0 = pnand %p640_p13, %p634_p10 }
  0x20   :  { %644 = shalt.err (!%p641_p0)
}
  0x21   :  { %47 = dma.hbm_to_vmem [thread:$0]  %s750_s2, 4096, %s42_s28, [#allocation6], %s673_s20, %s673_s20, %s674_s21  }
  0x22   :  { %665 = dma.done.wait [#allocation3], 256  }
  0x23   :  { %666 = vsyncadd [#allocation3], 4294967040 }
  0x24   :  { %667 = dma.done.wait [#allocation6], 4352  }
  0x25   :  { %668 = vsyncadd [#allocation6], 4294962944  ;;  %v78_v0 = vld [vmem:[#allocation7 + $0x78] sm:$0xff]  ;;  %v77_v1 = vld [vmem:[#allocation7 + $0x70] sm:$0xff]  ;;  %vm161_vm0 = vcmask 130048   ;;  %s676_s7 = smov [#allocation8]  }
  0x26   :  { %495 = vmatprep.subr.mxu0 %v78_v0  ;;  %v76_v2 = vld [vmem:[#allocation7 + $0x68] sm:$0xff]  ;;  %v75_v3 = vld [vmem:[#allocation7 + $0x60] sm:$0xff]  ;;  %v74_v5 = vld [vmem:[#allocation7 + $0x58] sm:$0xff]  ;;  %s431_s8 = sshll.u32 %s676_s7, 4  ;;  %s432_s8 = int_to_ptr.vmem [resolvable:$true] %s431_s8 }
  0x27   :  { %496 = vmatpush3.msra.mxu0 %v78_v0  ;;  %v720_v4 = vld [vmem:[#allocation2] sm:$0xff]  ;;  %v73_v6 = vld [vmem:[#allocation7 + $0x50] sm:$0xff]  ;;  %v72_v7 = vld [vmem:[#allocation7 + $0x48] sm:$0xff]  ;;  %s645_s9 = scalar_lea.vmem %s432_s8, 256  ;;  %p650_p2 = scmp.lt.s32.totalorder %s432_s8, %s432_s8 }
  0x28   :  { %497 = vmatprep.subr.mxu0 %v77_v1  ;;  %527 = vmatprep.mubr.f32.mxu0 %v720_v4  ;;  %v71_v8 = vld [vmem:[#allocation7 + $0x40] sm:$0xff]  ;;  %v70_v9 = vld [vmem:[#allocation7 + $0x38] sm:$0xff]  ;;  %v69_v10 = vld [vmem:[#allocation7 + $0x30] sm:$0xff]  ;;  %p646_p1 = scmp.ne.s32.totalorder %s432_s8, %s645_s9  ;;  %p651_p3 = scmp.lt.s32.totalorder %s645_s9, %s645_s9 }
  0x29   :  { %498 = vmatpush3.msra.mxu0 %v77_v1  ;;  %v68_v11 = vld [vmem:[#allocation7 + $0x28] sm:$0xff]  ;;  %v67_v12 = vld [vmem:[#allocation7 + $0x20] sm:$0xff]  ;;  %v66_v13 = vld [vmem:[#allocation7 + $0x18] sm:$0xff] }
  0x2a   :  { %499 = vmatprep.subr.mxu0 %v76_v2  ;;  %v65_v14 = vld [vmem:[#allocation7 + $0x10] sm:$0xff]  ;;  %v64_v15 = vld [vmem:[#allocation7 + $0x8] sm:$0xff]  ;;  %v63_v16 = vld [vmem:[#allocation7] sm:$0xff]  ;;  %p652_p4 = por %p651_p3, %p650_p2 }
  0x2b   :  { %500 = vmatpush3.msra.mxu0 %v76_v2  ;;  %v723_v17 = vld [vmem:[#allocation2 + $0x8] sm:$0xff]  ;;  %v61_v18 = vld [vmem:[#allocation5] sm:$0xff]  ;;  %v728_v21 = vld [vmem:[#allocation5 + $0x8] sm:$0xff] }
  0x2c   :  { %501 = vmatprep.subr.mxu0 %v75_v3  ;;  %534 = vmatprep.mubr.msk.f32.mxu1 %vm161_vm0, %v61_v18  ;;  %v261_v22 = vld [vmem:[#allocation7 + $0xf8] sm:$0xff]  ;;  %v260_v23 = vld [vmem:[#allocation7 + $0xf0] sm:$0xff]  ;;  %v259_v24 = vld [vmem:[#allocation7 + $0xe8] sm:$0xff]  ;;  %p653_p5 = pnand %p652_p4, %p646_p1 }
  0x2d   :  { %502 = vmatpush3.msra.mxu0 %v75_v3  ;;  %v258_v25 = vld [vmem:[#allocation7 + $0xe0] sm:$0xff]  ;;  %v257_v26 = vld [vmem:[#allocation7 + $0xd8] sm:$0xff]  ;;  %v256_v27 = vld [vmem:[#allocation7 + $0xd0] sm:$0xff] }
  0x2e   :  { %503 = vmatprep.subr.mxu0 %v74_v5  ;;  %v255_v28 = vld [vmem:[#allocation7 + $0xc8] sm:$0xff]  ;;  %v254_v29 = vld [vmem:[#allocation7 + $0xc0] sm:$0xff]  ;;  %v253_v30 = vld [vmem:[#allocation7 + $0xb8] sm:$0xff] }
  0x2f   :  { %504 = vmatpush3.msra.mxu0 %v74_v5  ;;  %v252_v31 = vld [vmem:[#allocation7 + $0xb0] sm:$0xff]  ;;  %v251_v32 = vld [vmem:[#allocation7 + $0xa8] sm:$0xff]  ;;  %v250_v33 = vld [vmem:[#allocation7 + $0xa0] sm:$0xff] }
  0x30   :  { %505 = vmatprep.subr.mxu0 %v73_v6  ;;  %v249_v34 = vld [vmem:[#allocation7 + $0x98] sm:$0xff]  ;;  %v248_v35 = vld [vmem:[#allocation7 + $0x90] sm:$0xff]  ;;  %v247_v36 = vld [vmem:[#allocation7 + $0x88] sm:$0xff] }
  0x31   :  { %506 = vmatpush3.msra.mxu0 %v73_v6  ;;  %v246_v37 = vld [vmem:[#allocation7 + $0x80] sm:$0xff] }
  0x32   :  { %507 = vmatprep.subr.mxu0 %v72_v7  ;;  %v444_v39 = vld [vmem:[%s751_s3] ss:$0 sm:$0xff]  ;;  %v448_v45 = vld [vmem:[%s751_s3 + $0x1] ss:$0 sm:$0xff] }
  0x33   :  { %508 = vmatpush3.msra.mxu0 %v72_v7 }
  0x34   :  { %509 = vmatprep.subr.mxu0 %v71_v8 }
  0x35   :  { %510 = vmatpush3.msra.mxu0 %v71_v8 }
  0x36   :  { %511 = vmatprep.subr.mxu0 %v70_v9 }
  0x37   :  { %512 = vmatpush3.msra.mxu0 %v70_v9 }
  0x38   :  { %513 = vmatprep.subr.mxu0 %v69_v10 }
  0x39   :  { %514 = vmatpush3.msra.mxu0 %v69_v10 }
  0x3a   :  { %515 = vmatprep.subr.mxu0 %v68_v11 }
  0x3b   :  { %516 = vmatpush3.msra.mxu0 %v68_v11 }
  0x3c   :  { %517 = vmatprep.subr.mxu0 %v67_v12 }
  0x3d   :  { %518 = vmatpush3.msra.mxu0 %v67_v12 }
  0x3e   :  { %519 = vmatprep.subr.mxu0 %v66_v13 }
  0x3f   :  { %520 = vmatpush3.msra.mxu0 %v66_v13 }
  0x40   :  { %521 = vmatprep.subr.mxu0 %v65_v14 }
  0x41   :  { %522 = vmatpush3.msra.mxu0 %v65_v14 }
  0x42   :  { %523 = vmatprep.subr.mxu0 %v64_v15 }
  0x43   :  { %524 = vmatpush3.msra.mxu0 %v64_v15 }
  0x44   :  { %525 = vmatprep.subr.mxu0 %v63_v16 }
  0x45   :  { %526 = vmatpush3.msra.mxu0 %v63_v16 }
  0x46   :  { %528 = vmatmul.mubr.f32.vlgmr.msra.gmra.mxu0 %v723_v17 }
  0x47   :  { %576 = vmatprep.mubr.msk.f32.mxu0 %vm161_vm0, %v61_v18 }
 0x106   :  { %v529_v19 = vpop.f32.mrf.mxu0 }
 0x107   :  { %530 = vmatprep.subr.mxu1 %v529_v19 }
 0x108   :  { %v145_v20 = vpop.f32.mrf.mxu0  ;;  %531 = vmatpush3.msra.mxu1 %v529_v19 }
 0x109   :  { %532 = vmatprep.subr.mxu1 %v145_v20 }
 0x10a   :  { %533 = vmatpush3.msra.mxu1 %v145_v20 }
 0x10b   :  { %535 = vmatmul.mubr.msk.f32.vlgmr.msra.gmra.mxu1 %vm161_vm0, %v728_v21  ;;  %537 = vmatprep.subr.mxu1 %v261_v22 }
 0x10c   :  { %538 = vmatpush3.msra.mxu1 %v261_v22 }
 0x10d   :  { %539 = vmatprep.subr.mxu1 %v260_v23 }
 0x10e   :  { %540 = vmatpush3.msra.mxu1 %v260_v23 }
 0x10f   :  { %541 = vmatprep.subr.mxu1 %v259_v24 }
 0x110   :  { %542 = vmatpush3.msra.mxu1 %v259_v24 }
 0x111   :  { %543 = vmatprep.subr.mxu1 %v258_v25 }
 0x112   :  { %544 = vmatpush3.msra.mxu1 %v258_v25 }
 0x113   :  { %545 = vmatprep.subr.mxu1 %v257_v26 }
 0x114   :  { %546 = vmatpush3.msra.mxu1 %v257_v26 }
 0x115   :  { %547 = vmatprep.subr.mxu1 %v256_v27 }
 0x116   :  { %548 = vmatpush3.msra.mxu1 %v256_v27 }
 0x117   :  { %549 = vmatprep.subr.mxu1 %v255_v28 }
 0x118   :  { %550 = vmatpush3.msra.mxu1 %v255_v28 }
 0x119   :  { %551 = vmatprep.subr.mxu1 %v254_v29 }
 0x11a   :  { %552 = vmatpush3.msra.mxu1 %v254_v29 }
 0x11b   :  { %553 = vmatprep.subr.mxu1 %v253_v30 }
 0x11c   :  { %554 = vmatpush3.msra.mxu1 %v253_v30 }
 0x11d   :  { %555 = vmatprep.subr.mxu1 %v252_v31 }
 0x11e   :  { %556 = vmatpush3.msra.mxu1 %v252_v31 }
 0x11f   :  { %557 = vmatprep.subr.mxu1 %v251_v32 }
 0x120   :  { %558 = vmatpush3.msra.mxu1 %v251_v32 }
 0x121   :  { %559 = vmatprep.subr.mxu1 %v250_v33 }
 0x122   :  { %560 = vmatpush3.msra.mxu1 %v250_v33 }
 0x123   :  { %561 = vmatprep.subr.mxu1 %v249_v34 }
 0x124   :  { %562 = vmatpush3.msra.mxu1 %v249_v34 }
 0x125   :  { %563 = vmatprep.subr.mxu1 %v248_v35 }
 0x126   :  { %564 = vmatpush3.msra.mxu1 %v248_v35 }
 0x127   :  { %565 = vmatprep.subr.mxu1 %v247_v36 }
 0x128   :  { %566 = vmatpush3.msra.mxu1 %v247_v36 }
 0x129   :  { %567 = vmatprep.subr.mxu1 %v246_v37 }
 0x12a   :  { %568 = vmatpush3.msra.mxu1 %v246_v37 }
 0x1cb   :  { %v536_v38 = vpop.f32.mrf.mxu1 }
 0x1cc   :  { %v240_v42 = vadd.f32 %v536_v38, %v444_v39 }
 0x1cd   :  { %v234_v40 = vpop.f32.mrf.mxu1 }
 0x1ce   :  { %v235_v41 = vadd.f32 %v444_v39, %v234_v40  ;;  %v244_v47 = vadd.f32 %v240_v42, %v723_v17 }
 0x1d0   :  { %569 = vmatprep.mubr.f32.mxu1 %v235_v41  ;;  %v243_v50 = vadd.f32 %v235_v41, %v720_v4 }
 0x1d1   :  { %570 = vmatmul.mubr.f32.vlgmr.msra.gmra.mxu1 %v240_v42 }
 0x291   :  { %v571_v43 = vpop.f32.mrf.mxu1 }
 0x292   :  { %572 = vmatprep.subr.mxu0 %v571_v43 }
 0x293   :  { %v328_v44 = vpop.f32.mrf.mxu1  ;;  %573 = vmatpush3.msra.mxu0 %v571_v43 }
 0x294   :  { %574 = vmatprep.subr.mxu0 %v328_v44 }
 0x295   :  { %575 = vmatpush3.msra.mxu0 %v328_v44 }
 0x296   :  { %577 = vmatmul.mubr.msk.f32.vlgmr.msra.gmra.mxu0 %vm161_vm0, %v728_v21 }
 0x356   :  { %v578_v46 = vpop.f32.mrf.mxu0 }
 0x357   :  { %v417_v48 = vadd.f32 %v578_v46, %v448_v45 }
 0x358   :  { %v411_v49 = vpop.f32.mrf.mxu0 }
 0x359   :  { %v421_v51 = vadd.f32 %v417_v48, %v244_v47  ;;  %v412_v52 = vadd.f32 %v448_v45, %v411_v49 }
 0x35b   :  { %v423_v53 = vmul.f32 0.33333334, %v421_v51  ;;  %v420_v54 = vadd.f32 %v412_v52, %v243_v50 }
 0x35d   :  { %425 = vst [vmem:[#allocation8 + $0x8] sm:$0xff] %v423_v53  ;;  %v422_v55 = vmul.f32 0.33333334, %v420_v54 }
 0x35f   :  { %424 = vst [vmem:[#allocation8] sm:$0xff] %v422_v55 }
 0x360   :  { %656 = shalt.err (!%p653_p5)
}
 0x361   :  { %437 = dma.vmem_to_hbm [thread:$0]  %s432_s8, 256, %s752_s4, [#allocation4], %s673_s20, %s673_s20, %s674_s21  }
 0x362   :  { %669 = dma.done.wait [#allocation4], 256  }
 0x363   :  { %670 = vsyncadd [#allocation4], 4294967040 }
 0x364   :  { %441 = vsyncpa [#allocation3], 1 }
 0x365   :  { %442 = vsyncpa [#allocation6], 1 }
 0x366   :  { %443 = vsyncpa [#allocation4], 1 }

</bundles_post_ra>
